<compile_context>
chip_gen: v5e
topology: v5e:2x2
jax: 0.10.0
libtpu: 0.0.40
codegen_flags: <defaults>
</compile_context>

<pallas_src>
import functools

import jax
import jax.numpy as jnp
from jax.experimental import pallas as pl
from jax.experimental.pallas import tpu as pltpu

NEG_SLOPE = 0.01  # PyTorch nn.LeakyReLU default
LANE = 128
SUBLANE = 8


def _round_up(x, m):
    return ((x + m - 1) // m) * m


def _cdiv(a, b):
    return -(-a // b)


def _leaky_relu(h):
    return jnp.where(h >= 0, h, NEG_SLOPE * h)


def _pad2(a, rows, cols, dtype):
    r, c = a.shape
    return jnp.pad(a, ((0, rows - r), (0, cols - c))).astype(dtype)


def _default_compute_dtype():
    """bf16 on v6e/v7x (native MXU/VPU bf16), f32 otherwise."""
    try:
        kind = jax.devices()[0].device_kind.lower()
    except Exception:  # pragma: no cover - defensive
        return jnp.float32
    if "v6" in kind or "v7" in kind:
        return jnp.bfloat16
    return jnp.float32


# --------------------------------------------------------------------------
# Kernel: whole MLP forward for one batch tile, entirely in VMEM.
# Matmuls accumulate in f32; LeakyReLU runs in f32 on the VPU; activations are
# cast back to the compute dtype (no-op for f32) before the next matmul.
# --------------------------------------------------------------------------
def value_mlp_kernel(x_ref,
                     w1_ref, b1_ref,
                     w2_ref, b2_ref,
                     w3_ref, b3_ref,
                     w4_ref, b4_ref,
                     o_ref):
    cdt = w1_ref.dtype
    x = x_ref[...].astype(cdt)

    h = jnp.dot(x, w1_ref[...],
                preferred_element_type=jnp.float32) + b1_ref[...]
    h = _leaky_relu(h).astype(cdt)

    h = jnp.dot(h, w2_ref[...],
                preferred_element_type=jnp.float32) + b2_ref[...]
    h = _leaky_relu(h).astype(cdt)

    h = jnp.dot(h, w3_ref[...],
                preferred_element_type=jnp.float32) + b3_ref[...]
    h = _leaky_relu(h).astype(cdt)

    v = jnp.dot(h, w4_ref[...],
                preferred_element_type=jnp.float32) + b4_ref[...]
    # Only column 0 is a real value; store the narrow (bt, 1) output block.
    o_ref[...] = v[:, 0:1].astype(o_ref.dtype)


# --------------------------------------------------------------------------
# One-time parameter preparation (padding + dtype cast off the hot path).
# Weights are stored [in_features, out_features] so the kernel computes
# x @ W + b (== PyTorch x @ W_pt.T + b).
# --------------------------------------------------------------------------
def prepare_params(params, compute_dtype=None):
    if compute_dtype is None:
        compute_dtype = _default_compute_dtype()
    n_state, H = params["w1"].shape
    H_p = _round_up(H, LANE)
    return {
        "w1": _pad2(params["w1"], n_state, H_p, compute_dtype),
        "b1": _pad2(params["b1"], 1, H_p, jnp.float32),
        "w2": _pad2(params["w2"], H_p, H_p, compute_dtype),
        "b2": _pad2(params["b2"], 1, H_p, jnp.float32),
        "w3": _pad2(params["w3"], H_p, H_p, compute_dtype),
        "b3": _pad2(params["b3"], 1, H_p, jnp.float32),
        "w4": _pad2(params["w4"], H_p, LANE, compute_dtype),
        "b4": _pad2(params["b4"], 1, LANE, jnp.float32),
    }


@functools.partial(jax.jit, static_argnames=("batch_tile",))
def value_forward(state, prepped, *, batch_tile=2048):
    """state: [B, n_state].  prepped: output of prepare_params."""
    B, n_state = state.shape
    n_state_w, H_p = prepped["w1"].shape
    assert n_state == n_state_w, "state feature dim does not match w1"
    cdt = prepped["w1"].dtype
    x_item = jnp.dtype(state.dtype).itemsize
    w_item = jnp.dtype(cdt).itemsize

    # Batch tile: multiple of 8 sublanes; prefer an even number of grid steps
    # so the "parallel" batch axis splits evenly across v7x's two TensorCores.
    bt = _round_up(min(batch_tile, B), SUBLANE)
    n_steps = _cdiv(B, bt)
    if n_steps > 1 and n_steps % 2 == 1:
        n_steps += 1
        bt = _round_up(_cdiv(B, n_steps), SUBLANE)
    grid = (_cdiv(B, bt),)

    full = lambda i: (0, 0)  # weights/biases: same full block every grid step
    in_specs = [
        pl.BlockSpec((bt, n_state), lambda i: (i, 0)),            # batch tile
        pl.BlockSpec((n_state, H_p), full), pl.BlockSpec((1, H_p), full),
        pl.BlockSpec((H_p, H_p), full),     pl.BlockSpec((1, H_p), full),
        pl.BlockSpec((H_p, H_p), full),     pl.BlockSpec((1, H_p), full),
        pl.BlockSpec((H_p, LANE), full),    pl.BlockSpec((1, LANE), full),
    ]
    out_specs = pl.BlockSpec((bt, 1), lambda i: (i, 0))            # narrow HBM writeback

    # VMEM budget (buffers lane-pad the minor dim to 128; double-buffered).
    x_buf = bt * max(n_state, LANE) * x_item
    o_buf = bt * LANE * 4
    w_buf = (n_state * H_p + 2 * H_p * H_p + H_p * LANE) * w_item
    b_buf = (3 * H_p + LANE) * 4
    need = 2 * (x_buf + o_buf) + 2 * (w_buf + b_buf)
    # Cap at 48 MiB: v7x has only 64 MiB VMEM/TC -> keep headroom for Mosaic scratch.
    vmem_limit = int(min(48 * 2**20, max(16 * 2**20, 2 * need)))

    flops = 2 * B * (n_state * H_p + 2 * H_p * H_p + H_p * LANE)
    bytes_accessed = (B * n_state * x_item          # input (natural width)
                      + w_buf + b_buf               # weights/biases (once)
                      + B * 1 * 4)                  # (B, 1) f32 output

    out = pl.pallas_call(
        value_mlp_kernel,
        out_shape=jax.ShapeDtypeStruct((B, 1), jnp.float32),
        grid_spec=pltpu.PrefetchScalarGridSpec(
            num_scalar_prefetch=0,
            grid=grid,
            in_specs=in_specs,
            out_specs=out_specs,
        ),
        compiler_params=pltpu.CompilerParams(
            dimension_semantics=("parallel",),
            vmem_limit_bytes=vmem_limit,
        ),
        cost_estimate=pl.CostEstimate(
            flops=flops, transcendentals=0, bytes_accessed=bytes_accessed),
    )(state,
      prepped["w1"], prepped["b1"],
      prepped["w2"], prepped["b2"],
      prepped["w3"], prepped["b3"],
      prepped["w4"], prepped["b4"])
    return out


# --------------------------------------------------------------------------
# Reference / test harness
# --------------------------------------------------------------------------
def init_params(key, n_state, n_hidden):
    """Deterministic synthetic init (stand-in for _init_weight)."""
    ks = jax.random.split(key, 8)
    scale = 0.1
    return {
        "w1": scale * jax.random.normal(ks[0], (n_state, n_hidden), jnp.float32),
        "b1": scale * jax.random.normal(ks[1], (1, n_hidden), jnp.float32),
        "w2": scale * jax.random.normal(ks[2], (n_hidden, n_hidden), jnp.float32),
        "b2": scale * jax.random.normal(ks[3], (1, n_hidden), jnp.float32),
        "w3": scale * jax.random.normal(ks[4], (n_hidden, n_hidden), jnp.float32),
        "b3": scale * jax.random.normal(ks[5], (1, n_hidden), jnp.float32),
        "w4": scale * jax.random.normal(ks[6], (n_hidden, 1), jnp.float32),
        "b4": scale * jax.random.normal(ks[7], (1, 1), jnp.float32),
    }


def reference_forward(state, p):
    def leaky(h):
        return jnp.where(h >= 0, h, NEG_SLOPE * h)
    h = leaky(state @ p["w1"] + p["b1"])
    h = leaky(h @ p["w2"] + p["b2"])
    h = leaky(h @ p["w3"] + p["b3"])
    return h @ p["w4"] + p["b4"]


if __name__ == "__main__":
    n_state = 32         # args.n_state
    n_value_hidden = 32  # args.n_value_hidden
    batch = 8

    key = jax.random.PRNGKey(0)
    k_state, k_params, k_big = jax.random.split(key, 3)
    state = jax.random.normal(k_state, (batch, n_state), jnp.float32)
    params = init_params(k_params, n_state, n_value_hidden)

    # f32 path, tiny batch (matches the module's toy config).
    p32 = prepare_params(params, jnp.float32)
    values = jax.block_until_ready(value_forward(state, p32))
    ref = reference_forward(state, params)
    assert values.shape == (batch, 1)
    assert jnp.allclose(values, ref, atol=1e-5, rtol=1e-5)

    # Larger ragged batch: multi-step pipelined grid, partial tail block,
    # even grid-step count for the v7x dual-TC split.
    big_state = jax.random.normal(k_big, (2500, n_state), jnp.float32)
    big_vals = jax.block_until_ready(
        value_forward(big_state, p32, batch_tile=512))
    big_ref = reference_forward(big_state, params)
    assert big_vals.shape == (2500, 1)
    assert jnp.allclose(big_vals, big_ref, atol=1e-4, rtol=1e-3)

    # bf16 weight/activation path (auto default on v6e/v7x): f32 MXU
    # accumulation + f32 LeakyReLU, so only the cast-in loses precision.
    pbf = prepare_params(params, jnp.bfloat16)
    bf_vals = jax.block_until_ready(
        value_forward(big_state, pbf, batch_tile=512))
    assert bf_vals.shape == (2500, 1)
    assert jnp.allclose(bf_vals, big_ref, atol=5e-2, rtol=5e-2)

    print("KERNEL_OK")
</pallas_src>

<mosaic_0001>
module attributes {stable_mosaic.version = 11 : i64} {
  func.func @value_mlp_kernel(%arg0: i32, %arg1: memref<8x32xf32, #tpu.memory_space<vmem>>, %arg2: memref<32x128xf32, #tpu.memory_space<vmem>>, %arg3: memref<1x128xf32, #tpu.memory_space<vmem>>, %arg4: memref<128x128xf32, #tpu.memory_space<vmem>>, %arg5: memref<1x128xf32, #tpu.memory_space<vmem>>, %arg6: memref<128x128xf32, #tpu.memory_space<vmem>>, %arg7: memref<1x128xf32, #tpu.memory_space<vmem>>, %arg8: memref<128x128xf32, #tpu.memory_space<vmem>>, %arg9: memref<1x128xf32, #tpu.memory_space<vmem>>, %arg10: memref<8x1xf32, #tpu.memory_space<vmem>>) attributes {dimension_semantics = [#tpu.dimension_semantics<parallel>], iteration_bounds = array<i64: 1>, scalar_prefetch = 0 : i64, scratch_operands = 0 : i64, tpu.core_type = #tpu.core_type<tc>, window_params = [{transform_indices = @transform_0, window_bounds = array<i64: 8, 32>}, {pipeline_mode = #tpu.pipeline_mode<synchronous>, transform_indices = @transform_1, window_bounds = array<i64: 32, 128>}, {pipeline_mode = #tpu.pipeline_mode<synchronous>, transform_indices = @transform_2, window_bounds = array<i64: 1, 128>}, {pipeline_mode = #tpu.pipeline_mode<synchronous>, transform_indices = @transform_3, window_bounds = array<i64: 128, 128>}, {pipeline_mode = #tpu.pipeline_mode<synchronous>, transform_indices = @transform_4, window_bounds = array<i64: 1, 128>}, {pipeline_mode = #tpu.pipeline_mode<synchronous>, transform_indices = @transform_5, window_bounds = array<i64: 128, 128>}, {pipeline_mode = #tpu.pipeline_mode<synchronous>, transform_indices = @transform_6, window_bounds = array<i64: 1, 128>}, {pipeline_mode = #tpu.pipeline_mode<synchronous>, transform_indices = @transform_7, window_bounds = array<i64: 128, 128>}, {pipeline_mode = #tpu.pipeline_mode<synchronous>, transform_indices = @transform_8, window_bounds = array<i64: 1, 128>}, {transform_indices = @transform_9, window_bounds = array<i64: 8, 1>}]} {
    %c0 = arith.constant 0 : index
    %c0_0 = arith.constant 0 : index
    %0 = vector.load %arg1[%c0, %c0_0] : memref<8x32xf32, #tpu.memory_space<vmem>>, vector<8x32xf32>
    %c0_1 = arith.constant 0 : index
    %c0_2 = arith.constant 0 : index
    %1 = vector.load %arg2[%c0_1, %c0_2] : memref<32x128xf32, #tpu.memory_space<vmem>>, vector<32x128xf32>
    %cst = arith.constant dense<0.000000e+00> : vector<8x128xf32>
    %2 = tpu.matmul %0, %1, %cst {dimension_numbers = #tpu.dot_dimension_numbers<[1], [0], [0], [1], [0, 0, 1, 1], [], []>} : vector<8x32xf32>, vector<32x128xf32>, vector<8x128xf32> -> vector<8x128xf32>
    %c0_3 = arith.constant 0 : index
    %c0_4 = arith.constant 0 : index
    %3 = vector.load %arg3[%c0_3, %c0_4] : memref<1x128xf32, #tpu.memory_space<vmem>>, vector<1x128xf32>
    %4 = vector.broadcast %3 : vector<1x128xf32> to vector<8x128xf32>
    %5 = arith.addf %2, %4 : vector<8x128xf32>
    %cst_5 = arith.constant 0.000000e+00 : f32
    %6 = vector.broadcast %cst_5 : f32 to vector<8x128xf32>
    %7 = arith.cmpf oge, %5, %6 : vector<8x128xf32>
    %cst_6 = arith.constant 0.00999999977 : f32
    %8 = vector.broadcast %cst_6 : f32 to vector<8x128xf32>
    %9 = arith.mulf %8, %5 : vector<8x128xf32>
    %10 = arith.select %7, %5, %9 : vector<8x128xi1>, vector<8x128xf32>
    %c0_7 = arith.constant 0 : index
    %c0_8 = arith.constant 0 : index
    %11 = vector.load %arg4[%c0_7, %c0_8] : memref<128x128xf32, #tpu.memory_space<vmem>>, vector<128x128xf32>
    %cst_9 = arith.constant dense<0.000000e+00> : vector<8x128xf32>
    %12 = tpu.matmul %10, %11, %cst_9 {dimension_numbers = #tpu.dot_dimension_numbers<[1], [0], [0], [1], [0, 0, 1, 1], [], []>} : vector<8x128xf32>, vector<128x128xf32>, vector<8x128xf32> -> vector<8x128xf32>
    %c0_10 = arith.constant 0 : index
    %c0_11 = arith.constant 0 : index
    %13 = vector.load %arg5[%c0_10, %c0_11] : memref<1x128xf32, #tpu.memory_space<vmem>>, vector<1x128xf32>
    %14 = vector.broadcast %13 : vector<1x128xf32> to vector<8x128xf32>
    %15 = arith.addf %12, %14 : vector<8x128xf32>
    %cst_12 = arith.constant 0.000000e+00 : f32
    %16 = vector.broadcast %cst_12 : f32 to vector<8x128xf32>
    %17 = arith.cmpf oge, %15, %16 : vector<8x128xf32>
    %cst_13 = arith.constant 0.00999999977 : f32
    %18 = vector.broadcast %cst_13 : f32 to vector<8x128xf32>
    %19 = arith.mulf %18, %15 : vector<8x128xf32>
    %20 = arith.select %17, %15, %19 : vector<8x128xi1>, vector<8x128xf32>
    %c0_14 = arith.constant 0 : index
    %c0_15 = arith.constant 0 : index
    %21 = vector.load %arg6[%c0_14, %c0_15] : memref<128x128xf32, #tpu.memory_space<vmem>>, vector<128x128xf32>
    %cst_16 = arith.constant dense<0.000000e+00> : vector<8x128xf32>
    %22 = tpu.matmul %20, %21, %cst_16 {dimension_numbers = #tpu.dot_dimension_numbers<[1], [0], [0], [1], [0, 0, 1, 1], [], []>} : vector<8x128xf32>, vector<128x128xf32>, vector<8x128xf32> -> vector<8x128xf32>
    %c0_17 = arith.constant 0 : index
    %c0_18 = arith.constant 0 : index
    %23 = vector.load %arg7[%c0_17, %c0_18] : memref<1x128xf32, #tpu.memory_space<vmem>>, vector<1x128xf32>
    %24 = vector.broadcast %23 : vector<1x128xf32> to vector<8x128xf32>
    %25 = arith.addf %22, %24 : vector<8x128xf32>
    %cst_19 = arith.constant 0.000000e+00 : f32
    %26 = vector.broadcast %cst_19 : f32 to vector<8x128xf32>
    %27 = arith.cmpf oge, %25, %26 : vector<8x128xf32>
    %cst_20 = arith.constant 0.00999999977 : f32
    %28 = vector.broadcast %cst_20 : f32 to vector<8x128xf32>
    %29 = arith.mulf %28, %25 : vector<8x128xf32>
    %30 = arith.select %27, %25, %29 : vector<8x128xi1>, vector<8x128xf32>
    %c0_21 = arith.constant 0 : index
    %c0_22 = arith.constant 0 : index
    %31 = vector.load %arg8[%c0_21, %c0_22] : memref<128x128xf32, #tpu.memory_space<vmem>>, vector<128x128xf32>
    %cst_23 = arith.constant dense<0.000000e+00> : vector<8x128xf32>
    %32 = tpu.matmul %30, %31, %cst_23 {dimension_numbers = #tpu.dot_dimension_numbers<[1], [0], [0], [1], [0, 0, 1, 1], [], []>} : vector<8x128xf32>, vector<128x128xf32>, vector<8x128xf32> -> vector<8x128xf32>
    %c0_24 = arith.constant 0 : index
    %c0_25 = arith.constant 0 : index
    %33 = vector.load %arg9[%c0_24, %c0_25] : memref<1x128xf32, #tpu.memory_space<vmem>>, vector<1x128xf32>
    %34 = vector.broadcast %33 : vector<1x128xf32> to vector<8x128xf32>
    %35 = arith.addf %32, %34 : vector<8x128xf32>
    %36 = vector.extract_strided_slice %35 {offsets = [0, 0], sizes = [8, 1], strides = [1, 1]} : vector<8x128xf32> to vector<8x1xf32>
    %c0_26 = arith.constant 0 : index
    %c0_27 = arith.constant 0 : index
    %37 = vector.load %arg10[%c0_26, %c0_27] : memref<8x1xf32, #tpu.memory_space<vmem>>, vector<8x1xf32>
    tpu.vector_store %arg10[%c0_26, %c0_27], %36 {strides = array<i32>} : memref<8x1xf32, #tpu.memory_space<vmem>>, vector<8x1xf32>,
    return
  }
  func.func @transform_0(%arg0: i32) -> (i32, i32) {
    %c0_i32 = arith.constant 0 : i32
    %c0_i32_0 = arith.constant 0 : i32
    return %arg0, %c0_i32 : i32, i32
  }
  func.func @transform_1(%arg0: i32) -> (i32, i32) {
    %c0_i32 = arith.constant 0 : i32
    %c0_i32_0 = arith.constant 0 : i32
    %c0_i32_1 = arith.constant 0 : i32
    return %c0_i32, %c0_i32_0 : i32, i32
  }
  func.func @transform_2(%arg0: i32) -> (i32, i32) {
    %c0_i32 = arith.constant 0 : i32
    %c0_i32_0 = arith.constant 0 : i32
    %c0_i32_1 = arith.constant 0 : i32
    return %c0_i32, %c0_i32_0 : i32, i32
  }
  func.func @transform_3(%arg0: i32) -> (i32, i32) {
    %c0_i32 = arith.constant 0 : i32
    %c0_i32_0 = arith.constant 0 : i32
    %c0_i32_1 = arith.constant 0 : i32
    return %c0_i32, %c0_i32_0 : i32, i32
  }
  func.func @transform_4(%arg0: i32) -> (i32, i32) {
    %c0_i32 = arith.constant 0 : i32
    %c0_i32_0 = arith.constant 0 : i32
    %c0_i32_1 = arith.constant 0 : i32
    return %c0_i32, %c0_i32_0 : i32, i32
  }
  func.func @transform_5(%arg0: i32) -> (i32, i32) {
    %c0_i32 = arith.constant 0 : i32
    %c0_i32_0 = arith.constant 0 : i32
    %c0_i32_1 = arith.constant 0 : i32
    return %c0_i32, %c0_i32_0 : i32, i32
  }
  func.func @transform_6(%arg0: i32) -> (i32, i32) {
    %c0_i32 = arith.constant 0 : i32
    %c0_i32_0 = arith.constant 0 : i32
    %c0_i32_1 = arith.constant 0 : i32
    return %c0_i32, %c0_i32_0 : i32, i32
  }
  func.func @transform_7(%arg0: i32) -> (i32, i32) {
    %c0_i32 = arith.constant 0 : i32
    %c0_i32_0 = arith.constant 0 : i32
    %c0_i32_1 = arith.constant 0 : i32
    return %c0_i32, %c0_i32_0 : i32, i32
  }
  func.func @transform_8(%arg0: i32) -> (i32, i32) {
    %c0_i32 = arith.constant 0 : i32
    %c0_i32_0 = arith.constant 0 : i32
    %c0_i32_1 = arith.constant 0 : i32
    return %c0_i32, %c0_i32_0 : i32, i32
  }
  func.func @transform_9(%arg0: i32) -> (i32, i32) {
    %c0_i32 = arith.constant 0 : i32
    %c0_i32_0 = arith.constant 0 : i32
    return %arg0, %c0_i32 : i32, i32
  }
}

</mosaic_0001>

<bundles_post_ra>
// kernel: value_forward.1
= control target key start
LH: loop header
LB: loop body
LE: loop exit
PB: predicated region body
PF: predicated region fallthrough
CT: control target
= control target key end

     0   :  { %14 = vsyncpa [#allocation3], 0  ;;  %s559_s0 = inlined_call_operand.hbm [shape: f32[8,32], index: 0, kind: input, shape index: {}]   ;;  %s560_s1 = inlined_call_operand.hbm [shape: f32[32,128], index: 1, kind: input, shape index: {}]   ;;  %s561_s2 = inlined_call_operand.hbm [shape: f32[1,128], index: 2, kind: input, shape index: {}]   ;;  %s562_s3 = inlined_call_operand.hbm [shape: f32[128,128], index: 3, kind: input, shape index: {}]   ;;  %s563_s4 = inlined_call_operand.vmem [shape: f32[1,128], index: 4, kind: input, shape index: {}]   ;;  %s564_s5 = inlined_call_operand.hbm [shape: f32[128,128], index: 5, kind: input, shape index: {}]   ;;  %s565_s6 = inlined_call_operand.vmem [shape: f32[1,128], index: 6, kind: input, shape index: {}]   ;;  %s566_s7 = inlined_call_operand.hbm [shape: f32[128,128], index: 7, kind: input, shape index: {}]   ;;  %s567_s8 = inlined_call_operand.vmem [shape: f32[1,128], index: 8, kind: input, shape index: {}]   ;;  %s568_s9 = inlined_call_operand.vmem [shape: f32[8,1], index: 9, kind: output, shape index: {}]  }
   0x1   :  { %15 = vsyncpa [#allocation5], 0 }
   0x2   :  { %16 = vsyncpa [#allocation8], 0  ;;  %s33_s11 = sshll.u32 %s560_s1, 4  ;;  %s34_s11 = int_to_ptr.hbm [resolvable:$true] %s33_s11 }
   0x3   :  { %17 = vsyncpa [#allocation11], 0  ;;  %s459_s12 = smov [#allocation4]   ;;  %s57_s16 = sshll.u32 %s562_s3, 4  ;;  %s58_s16 = int_to_ptr.hbm [resolvable:$true] %s57_s16 }
   0x4   :  { %s35_s13 = sshll.u32 %s459_s12, 4  ;;  %s460_s17 = smov 128   ;;  %s36_s13 = int_to_ptr.vmem [resolvable:$true] %s35_s13 }
   0x5   :  { %s461_s18 = smov 8   ;;  %s462_s19 = smov [#allocation7]  }
   0x6   :  { %41 = dma.hbm_to_vmem [thread:$0]  %s34_s11, 512, %s36_s13, [#allocation5], %s460_s17, %s460_s17, %s461_s18  }
   0x7   :  { %s59_s20 = sshll.u32 %s462_s19, 4  ;;  %s23_s22 = sshll.u32 %s559_s0, 4  ;;  %s60_s20 = int_to_ptr.vmem [resolvable:$true] %s59_s20  ;;  %s24_s22 = int_to_ptr.hbm [resolvable:$true] %s23_s22 }
   0x8   :  { %65 = dma.hbm_to_vmem [thread:$0]  %s58_s16, 2048, %s60_s20, [#allocation8], %s460_s17, %s460_s17, %s461_s18  }
   0x9   :  { %s47_s24 = sshll.u32 %s561_s2, 4  ;;  %s463_s25 = smov [#allocation2]   ;;  %s48_s24 = int_to_ptr.hbm [resolvable:$true] %s47_s24 }
   0xa   :  { %s25_s26 = sshll.u32 %s463_s25, 4  ;;  %s464_s27 = smov [#allocation6]   ;;  %s26_s26 = int_to_ptr.vmem [resolvable:$true] %s25_s26 }
   0xb   :  { %28 = dma.hbm_to_vmem [thread:$0]  %s24_s22, 128, %s26_s26, [#allocation3]  }
   0xc   :  { %s49_s28 = sshll.u32 %s464_s27, 4  ;;  %s72_s0 = sshll.u32 %s564_s5, 4  ;;  %s50_s28 = int_to_ptr.vmem [resolvable:$true] %s49_s28  ;;  %s73_s0 = int_to_ptr.hbm [resolvable:$true] %s72_s0 }
   0xd   :  { %52 = dma.hbm_to_vmem [thread:$0]  %s48_s24, 16, %s50_s28, [#allocation5]  }
   0xe   :  { %s87_s12 = sshll.u32 %s566_s7, 4  ;;  %s465_s13 = smov [#allocation9]   ;;  %s88_s12 = int_to_ptr.hbm [resolvable:$true] %s87_s12 }
   0xf   :  { %s74_s2 = sshll.u32 %s465_s13, 4  ;;  %s466_s14 = smov [#allocation10]   ;;  %s75_s2 = int_to_ptr.vmem [resolvable:$true] %s74_s2 }
  0x10   :  { %80 = dma.hbm_to_vmem [thread:$0]  %s73_s0, 2048, %s75_s2, [#allocation8], %s460_s17, %s460_s17, %s461_s18  }
  0x11   :  { %s89_s15 = sshll.u32 %s466_s14, 4  ;;  %s90_s15 = int_to_ptr.vmem [resolvable:$true] %s89_s15 }
  0x12   :  { %95 = dma.hbm_to_vmem [thread:$0]  %s88_s12, 2048, %s90_s15, [#allocation11], %s460_s17, %s460_s17, %s461_s18  }
  0x13   :  { %451 = dma.done.wait [#allocation3], 128  }
  0x14   :  { %452 = vsyncadd [#allocation3], 4294967168 }
  0x15   :  { %453 = dma.done.wait [#allocation5], 528  }
  0x16   :  { %454 = vsyncadd [#allocation5], 4294966768 }
  0x17   :  { %455 = dma.done.wait [#allocation8], 4096  }
  0x18   :  { %456 = vsyncadd [#allocation8], 4294963200 }
  0x19   :  { %457 = dma.done.wait [#allocation11], 2048  }
  0x1a   :  { %458 = vsyncadd [#allocation11], 4294965248  ;;  %v126_v0 = vld [vmem:[#allocation4 + $0x18] sm:$0xff]  ;;  %v125_v1 = vld [vmem:[#allocation4 + $0x10] sm:$0xff]  ;;  %vm131_vm0 = vcmask 261120   ;;  %vm284_vm4 = vcmask 7168  }
  0x1b   :  { %147 = vmatpush.msra.mxu0 %v126_v0  ;;  %v173_v2 = vld [vmem:[#allocation7 + $0x78] sm:$0xff]  ;;  %v124_v3 = vld [vmem:[#allocation4 + $0x8] sm:$0xff]  ;;  %v172_v4 = vld [vmem:[#allocation7 + $0x70] sm:$0xff] }
  0x1c   :  { %178 = vmatpush.msra.mxu1 %v173_v2  ;;  %v171_v5 = vld [vmem:[#allocation7 + $0x68] sm:$0xff]  ;;  %v123_v6 = vld [vmem:[#allocation4] sm:$0xff]  ;;  %v122_v7 = vld [vmem:[#allocation2] sm:$0xff] }
  0x1d   :  { %148 = vmatpush.msra.mxu0 %v125_v1  ;;  %v170_v8 = vld [vmem:[#allocation7 + $0x60] sm:$0xff]  ;;  %v169_v9 = vld [vmem:[#allocation7 + $0x58] sm:$0xff]  ;;  %v168_v10 = vld [vmem:[#allocation7 + $0x50] sm:$0xff] }
  0x1e   :  { %179 = vmatpush.msra.mxu1 %v172_v4  ;;  %v167_v11 = vld [vmem:[#allocation7 + $0x48] sm:$0xff]  ;;  %v166_v12 = vld [vmem:[#allocation7 + $0x40] sm:$0xff]  ;;  %v165_v13 = vld [vmem:[#allocation7 + $0x38] sm:$0xff] }
  0x1f   :  { %149 = vmatpush.msra.mxu0 %v124_v3  ;;  %v164_v14 = vld [vmem:[#allocation7 + $0x30] sm:$0xff]  ;;  %v163_v15 = vld [vmem:[#allocation7 + $0x28] sm:$0xff]  ;;  %v162_v16 = vld [vmem:[#allocation7 + $0x20] sm:$0xff] }
  0x20   :  { %180 = vmatpush.msra.mxu1 %v171_v5  ;;  %v161_v17 = vld [vmem:[#allocation7 + $0x18] sm:$0xff]  ;;  %v160_v18 = vld [vmem:[#allocation7 + $0x10] sm:$0xff]  ;;  %v159_v19 = vld [vmem:[#allocation7 + $0x8] sm:$0xff] }
  0x21   :  { %150 = vmatpush.msra.mxu0 %v123_v6  ;;  %v158_v20 = vld [vmem:[#allocation7] sm:$0xff]  ;;  %v216_v21 = vld [vmem:[#allocation9 + $0x78] sm:$0xff]  ;;  %v215_v22 = vld [vmem:[#allocation9 + $0x70] sm:$0xff] }
  0x22   :  { %294 = vmatmul.msk.f32.vlgmr.msra.gmra.mxu0 %vm131_vm0, %v122_v7  ;;  %181 = vmatpush.msra.mxu1 %v170_v8  ;;  %v214_v23 = vld [vmem:[#allocation9 + $0x68] sm:$0xff]  ;;  %v213_v24 = vld [vmem:[#allocation9 + $0x60] sm:$0xff]  ;;  %v212_v25 = vld [vmem:[#allocation9 + $0x58] sm:$0xff] }
  0x23   :  { %221 = vmatpush.msra.mxu2 %v216_v21  ;;  %v211_v26 = vld [vmem:[#allocation9 + $0x50] sm:$0xff]  ;;  %v210_v27 = vld [vmem:[#allocation9 + $0x48] sm:$0xff]  ;;  %v209_v28 = vld [vmem:[#allocation9 + $0x40] sm:$0xff] }
  0x24   :  { %182 = vmatpush.msra.mxu1 %v169_v9  ;;  %v208_v29 = vld [vmem:[#allocation9 + $0x38] sm:$0xff]  ;;  %v207_v30 = vld [vmem:[#allocation9 + $0x30] sm:$0xff]  ;;  %v206_v31 = vld [vmem:[#allocation9 + $0x28] sm:$0xff] }
  0x25   :  { %222 = vmatpush.msra.mxu2 %v215_v22  ;;  %v205_v32 = vld [vmem:[#allocation9 + $0x20] sm:$0xff]  ;;  %v204_v33 = vld [vmem:[#allocation9 + $0x18] sm:$0xff]  ;;  %v203_v39 = vld [vmem:[#allocation9 + $0x10] sm:$0xff] }
  0x26   :  { %183 = vmatpush.msra.mxu1 %v168_v10  ;;  %v303_v34 = vld [vmem:[#allocation6] ss:$0 sm:$0xff]  ;;  %v202_v40 = vld [vmem:[#allocation9 + $0x8] sm:$0xff]  ;;  %v201_v41 = vld [vmem:[#allocation9] sm:$0xff] }
  0x27   :  { %223 = vmatpush.msra.mxu2 %v214_v23  ;;  %v259_v42 = vld [vmem:[#allocation10 + $0x78] sm:$0xff]  ;;  %v258_v43 = vld [vmem:[#allocation10 + $0x70] sm:$0xff]  ;;  %v257_v44 = vld [vmem:[#allocation10 + $0x68] sm:$0xff] }
  0x28   :  { %184 = vmatpush.msra.mxu1 %v167_v11  ;;  %264 = vmatpush.msra.mxu3 %v259_v42  ;;  %v256_v45 = vld [vmem:[#allocation10 + $0x60] sm:$0xff]  ;;  %v255_v46 = vld [vmem:[#allocation10 + $0x58] sm:$0xff]  ;;  %v254_v47 = vld [vmem:[#allocation10 + $0x50] sm:$0xff] }
  0x29   :  { %224 = vmatpush.msra.mxu2 %v213_v24  ;;  %v253_v48 = vld [vmem:[#allocation10 + $0x48] sm:$0xff]  ;;  %v252_v49 = vld [vmem:[#allocation10 + $0x40] sm:$0xff]  ;;  %v251_v50 = vld [vmem:[#allocation10 + $0x38] sm:$0xff] }
  0x2a   :  { %185 = vmatpush.msra.mxu1 %v166_v12  ;;  %265 = vmatpush.msra.mxu3 %v258_v43  ;;  %v250_v51 = vld [vmem:[#allocation10 + $0x30] sm:$0xff]  ;;  %v249_v52 = vld [vmem:[#allocation10 + $0x28] sm:$0xff]  ;;  %v248_v53 = vld [vmem:[#allocation10 + $0x20] sm:$0xff] }
  0x2b   :  { %225 = vmatpush.msra.mxu2 %v212_v25  ;;  %v247_v54 = vld [vmem:[#allocation10 + $0x18] sm:$0xff]  ;;  %v304_v55 = vld [vmem:[%s563_s4] ss:$0 sm:$0xff]  ;;  %v245_v61 = vld [vmem:[#allocation10 + $0x8] sm:$0xff] }
  0x2c   :  { %186 = vmatpush.msra.mxu1 %v165_v13  ;;  %266 = vmatpush.msra.mxu3 %v257_v44  ;;  %v246_v60 = vld [vmem:[#allocation10 + $0x10] sm:$0xff]  ;;  %v244_v62 = vld [vmem:[#allocation10] sm:$0xff] }
  0x2d   :  { %226 = vmatpush.msra.mxu2 %v211_v26  ;;  %v305_v63 = vld [vmem:[%s565_s6] ss:$0 sm:$0xff] }
  0x2e   :  { %187 = vmatpush.msra.mxu1 %v164_v14  ;;  %267 = vmatpush.msra.mxu3 %v256_v45  ;;  %v306_v4 = vld [vmem:[%s567_s8] ss:$0 sm:$0xff] }
  0x2f   :  { %227 = vmatpush.msra.mxu2 %v210_v27 }
  0x30   :  { %188 = vmatpush.msra.mxu1 %v163_v15  ;;  %268 = vmatpush.msra.mxu3 %v255_v46 }
  0x31   :  { %228 = vmatpush.msra.mxu2 %v209_v28 }
  0x32   :  { %189 = vmatpush.msra.mxu1 %v162_v16  ;;  %269 = vmatpush.msra.mxu3 %v254_v47 }
  0x33   :  { %229 = vmatpush.msra.mxu2 %v208_v29 }
  0x34   :  { %190 = vmatpush.msra.mxu1 %v161_v17  ;;  %270 = vmatpush.msra.mxu3 %v253_v48 }
  0x35   :  { %230 = vmatpush.msra.mxu2 %v207_v30 }
  0x36   :  { %191 = vmatpush.msra.mxu1 %v160_v18  ;;  %271 = vmatpush.msra.mxu3 %v252_v49 }
  0x37   :  { %231 = vmatpush.msra.mxu2 %v206_v31 }
  0x38   :  { %192 = vmatpush.msra.mxu1 %v159_v19  ;;  %272 = vmatpush.msra.mxu3 %v251_v50 }
  0x39   :  { %232 = vmatpush.msra.mxu2 %v205_v32 }
  0x3a   :  { %193 = vmatpush.msra.mxu1 %v158_v20  ;;  %273 = vmatpush.msra.mxu3 %v250_v51 }
  0x3b   :  { %233 = vmatpush.msra.mxu2 %v204_v33 }
  0x3c   :  { %274 = vmatpush.msra.mxu3 %v249_v52 }
  0x3d   :  { %234 = vmatpush.msra.mxu2 %v203_v39 }
  0x3e   :  { %275 = vmatpush.msra.mxu3 %v248_v53 }
  0x3f   :  { %235 = vmatpush.msra.mxu2 %v202_v40 }
  0x40   :  { %276 = vmatpush.msra.mxu3 %v247_v54 }
  0x41   :  { %236 = vmatpush.msra.mxu2 %v201_v41 }
  0x42   :  { %277 = vmatpush.msra.mxu3 %v246_v60 }
  0x44   :  { %278 = vmatpush.msra.mxu3 %v245_v61 }
  0x46   :  { %279 = vmatpush.msra.mxu3 %v244_v62 }
  0x9f   :  { %v152_v35 = vpop.f32.mrf.mxu0 }
  0xa0   :  { %v153_v36 = vadd.f32 %v303_v34, %v152_v35 }
  0xa2   :  { %vm155_vm1 = vcmp.ge.f32.partialorder %v153_v36, 0.0  ;;  %v156_v37 = vmul.f32 0.01, %v153_v36 }
  0xa4   :  { %v157_v38 = vsel %vm155_vm1, %v153_v36, %v156_v37 }
  0xa5   :  { %194 = vmatmul.f32.vlgmr.msra.gmra.mxu1 %v157_v38 }
 0x122   :  { %v195_v56 = vpop.f32.mrf.mxu1 }
 0x123   :  { %v196_v57 = vadd.f32 %v304_v55, %v195_v56 }
 0x125   :  { %vm198_vm2 = vcmp.ge.f32.partialorder %v196_v57, 0.0  ;;  %v199_v58 = vmul.f32 0.01, %v196_v57 }
 0x127   :  { %v200_v59 = vsel %vm198_vm2, %v196_v57, %v199_v58 }
 0x128   :  { %237 = vmatmul.f32.vlgmr.msra.gmra.mxu2 %v200_v59 }
 0x1ab   :  { %v238_v0 = vpop.f32.mrf.mxu2 }
 0x1ac   :  { %v239_v1 = vadd.f32 %v305_v63, %v238_v0 }
 0x1ae   :  { %vm241_vm3 = vcmp.ge.f32.partialorder %v239_v1, 0.0  ;;  %v242_v2 = vmul.f32 0.01, %v239_v1 }
 0x1b0   :  { %v243_v3 = vsel %vm241_vm3, %v239_v1, %v242_v2 }
 0x1b1   :  { %280 = vmatmul.f32.vlgmr.msra.gmra.mxu3 %v243_v3 }
 0x234   :  { %v281_v5 = vpop.f32.mrf.mxu3 }
 0x235   :  { %v282_v6 = vadd.f32 %v306_v4, %v281_v5 }
 0x237   :  { %285 = vst.msk [vmem:[%s568_s9] sm:$0xff] %vm284_vm4, %v282_v6 }
 0x238   :  { %290 = vsyncpa [#allocation3], 1 }
 0x239   :  { %291 = vsyncpa [#allocation5], 1 }
 0x23a   :  { %292 = vsyncpa [#allocation8], 1 }
 0x23b   :  { %293 = vsyncpa [#allocation11], 1 }

</bundles_post_ra>
